<compile_context>
chip_gen: v6e
topology: v6e:2x2x1
jax: 0.10.0
libtpu: 0.0.40
codegen_flags: <defaults>
</compile_context>

<pallas_src>
import functools

import jax
import jax.numpy as jnp
from jax import lax
from jax.experimental import pallas as pl
from jax.experimental.pallas import tpu as pltpu

_TARGET_STEP_BYTES = 2 * 1024 * 1024  # ~2 MiB HBM traffic per grid step.


# ---------------------------------------------------------------------------
# VPU path — small channel counts (the OutConv case).
# ---------------------------------------------------------------------------
def _outconv_vpu_kernel(c_in, c_out, bn, r_chunk, x_ref, w_ref, b_ref, o_ref):
    # x_ref: (BN, C_in, R, 128) VMEM   w_ref: (C_out, C_in) SMEM
    # b_ref: (C_out,)          SMEM   o_ref: (BN, C_out, R, 128) VMEM
    rows = x_ref.shape[2]
    n_chunks = rows // r_chunk

    def mac_chunk(n, base):
        # co-outer / ci-inner: only one f32 accumulator and one input chunk live
        # at a time (bounded vreg set); every store is a dense (r_chunk,128) slab.
        for co in range(c_out):
            acc = (x_ref[n, 0, pl.ds(base, r_chunk), :].astype(jnp.float32)
                   * w_ref[co, 0] + b_ref[co])
            for ci in range(1, c_in):
                acc = acc + (x_ref[n, ci, pl.ds(base, r_chunk), :].astype(jnp.float32)
                             * w_ref[co, ci])
            o_ref[n, co, pl.ds(base, r_chunk), :] = acc.astype(o_ref.dtype)

    for n in range(bn):                      # BN is a small static constant.
        if n_chunks == 1:
            mac_chunk(n, 0)
        else:
            def body(j, carry, n=n):
                base = pl.multiple_of(j * r_chunk, r_chunk)
                mac_chunk(n, base)
                return carry
            lax.fori_loop(0, n_chunks, body, 0)


def _outconv_vpu(x_nchw, weight, bias):
    N, C_in, H, W = x_nchw.shape
    C_out = weight.shape[0]
    M = H * W
    itemsize = jnp.dtype(x_nchw.dtype).itemsize

    # HBM bytes moved per spatial row (128 lanes) per image (input + output).
    bytes_per_row = 128 * (C_in + C_out) * itemsize
    max_rows = max(8, _TARGET_STEP_BYTES // bytes_per_row)

    r_total0 = pl.cdiv(M, 128)
    # Whole image per block: allowed if it fits the payload target and either is
    # small or sublane-aligned (full-dim blocks are exempt from the 8-multiple rule).
    whole_image = (r_total0 <= max_rows) and (r_total0 <= 64 or r_total0 % 8 == 0)

    if whole_image:
        m_pad = r_total0 * 128                    # pad only to the 128 granule.
        rows = r_total0
        spatial_tiles = 1
        per_image_bytes = rows * bytes_per_row
        # Pack images per block when each image is small, but keep >= 2 grid steps
        # so both v7x TensorCores get work (v5e/v6e unaffected).
        bn = 1
        for cand in range(N, 0, -1):
            if (N % cand == 0 and cand * per_image_bytes <= _TARGET_STEP_BYTES
                    and (N // cand) >= min(2, N)):
                bn = cand
                break
    else:
        # Tile the spatial axis.  Pad only to the 1024-lane granule so the row
        # count is a multiple of 8 — no full-tile pad/slice round-trip.
        m_pad = pl.cdiv(M, 1024) * 1024
        r_total_p = m_pad // 128
        rows = 8
        d = 16
        while d <= min(r_total_p, max_rows):
            if r_total_p % d == 0:
                rows = d
            d += 8
        spatial_tiles = r_total_p // rows         # >= 2 here by construction.
        bn = 1

    r_total = m_pad // 128

    x = x_nchw.reshape(N, C_in, M)
    if m_pad != M:
        x = jnp.pad(x, ((0, 0), (0, 0), (0, m_pad - M)))
    x = x.reshape(N, C_in, r_total, 128)

    # In-kernel MAC chunk size (rows): bounds the vreg live-set for big blocks.
    r_chunk = rows
    for cand in (32, 16, 8):
        if rows % cand == 0:
            r_chunk = cand
            break

    kernel = functools.partial(_outconv_vpu_kernel, C_in, C_out, bn, r_chunk)
    w_in = weight.astype(jnp.float32)             # (C_out, C_in) -> SMEM scalars
    b_in = bias.astype(jnp.float32)               # (C_out,)      -> SMEM scalars

    out = pl.pallas_call(
        kernel,
        out_shape=jax.ShapeDtypeStruct((N, C_out, r_total, 128), x_nchw.dtype),
        grid_spec=pltpu.PrefetchScalarGridSpec(
            num_scalar_prefetch=0,
            grid=(N // bn, spatial_tiles),
            in_specs=[
                pl.BlockSpec((bn, C_in, rows, 128), lambda n, i: (n, 0, i, 0)),
                pl.BlockSpec(memory_space=pltpu.MemorySpace.SMEM),
                pl.BlockSpec(memory_space=pltpu.MemorySpace.SMEM),
            ],
            out_specs=pl.BlockSpec((bn, C_out, rows, 128), lambda n, i: (n, 0, i, 0)),
        ),
        compiler_params=pltpu.CompilerParams(
            dimension_semantics=("parallel", "parallel"),
        ),
        cost_estimate=pl.CostEstimate(
            flops=2 * N * M * C_in * C_out,
            transcendentals=0,
            bytes_accessed=itemsize * N * M * (C_in + C_out) + 4 * (C_out * C_in + C_out),
        ),
    )(x, w_in, b_in)

    out = out.reshape(N, C_out, m_pad)
    if m_pad != M:
        out = out[:, :, :M]
    return out.reshape(N, C_out, H, W)


# ---------------------------------------------------------------------------
# MXU fallback — large channel counts only (not the OutConv regime).
# ---------------------------------------------------------------------------
def _outconv_mxu_kernel(x_ref, w_ref, b_ref, o_ref):
    # x_ref: (C_in, tm) VMEM, w_ref: (C_out, C_in) VMEM, b_ref: (C_out, 1) VMEM.
    acc = jnp.dot(w_ref[...], x_ref[...], preferred_element_type=jnp.float32)
    o_ref[...] = (acc + b_ref[...]).astype(o_ref.dtype)


def _outconv_mxu(x_nchw, weight, bias):
    N, C_in, H, W = x_nchw.shape
    C_out = weight.shape[0]
    M = H * W
    itemsize = jnp.dtype(x_nchw.dtype).itemsize

    bytes_per_lane = (C_in + C_out) * itemsize
    tm = max(256, (_TARGET_STEP_BYTES // bytes_per_lane) // 256 * 256)  # mult of 256
    m_256 = pl.cdiv(M, 256) * 256
    tm = min(tm, m_256)
    m_pad = pl.cdiv(M, tm) * tm

    x = x_nchw.reshape(N, C_in, M)
    if m_pad != M:
        x = jnp.pad(x, ((0, 0), (0, 0), (0, m_pad - M)))
    n_tiles = m_pad // tm

    out = pl.pallas_call(
        _outconv_mxu_kernel,
        out_shape=jax.ShapeDtypeStruct((N, C_out, m_pad), x_nchw.dtype),
        grid_spec=pltpu.PrefetchScalarGridSpec(
            num_scalar_prefetch=0,
            grid=(N, n_tiles),
            in_specs=[
                pl.BlockSpec((None, C_in, tm), lambda n, i: (n, 0, i)),
                pl.BlockSpec((C_out, C_in), lambda n, i: (0, 0)),
                pl.BlockSpec((C_out, 1), lambda n, i: (0, 0)),
            ],
            out_specs=pl.BlockSpec((None, C_out, tm), lambda n, i: (n, 0, i)),
        ),
        compiler_params=pltpu.CompilerParams(
            dimension_semantics=("parallel", "parallel"),
        ),
        cost_estimate=pl.CostEstimate(
            flops=2 * N * M * C_in * C_out,
            transcendentals=0,
            bytes_accessed=itemsize * N * M * (C_in + C_out) + 4 * (C_out * C_in + C_out),
        ),
    )(x, weight, bias.reshape(C_out, 1))

    return out[:, :, :M].reshape(N, C_out, H, W)


# ---------------------------------------------------------------------------
# Public entry point (matches OutConv.forward semantics).
# ---------------------------------------------------------------------------
def outconv_pallas(x_nchw, weight, bias):
    """1x1 conv. x: (N,C_in,H,W); weight: (C_out,C_in) or (C_out,C_in,1,1); bias: (C_out,)."""
    weight = weight.reshape(weight.shape[0], -1)
    C_in = x_nchw.shape[1]
    C_out = weight.shape[0]
    if C_in * C_out <= 512:          # OutConv regime -> unrolled VPU MAC.
        return _outconv_vpu(x_nchw, weight, bias)
    return _outconv_mxu(x_nchw, weight, bias)


def _reference(x, weight, bias):
    return jnp.einsum("nchw,oc->nohw", x, weight) + bias[None, :, None, None]


if __name__ == "__main__":
    key = jax.random.PRNGKey(0)
    k_x, k_w, k_b = jax.random.split(key, 3)

    N, C_in, H, W = 2, 4, 16, 16
    C_out = 3

    x = jax.random.normal(k_x, (N, C_in, H, W), dtype=jnp.float32)
    # Parameters match nn.Conv2d(C_in, C_out, kernel_size=1):
    # weight (C_out, C_in, 1, 1) stored squeezed as (C_out, C_in); bias (C_out,).
    weight = jax.random.normal(k_w, (C_out, C_in), dtype=jnp.float32) * 0.1
    bias = jax.random.normal(k_b, (C_out,), dtype=jnp.float32) * 0.1

    y = jax.block_until_ready(outconv_pallas(x, weight, bias))
    y_ref = _reference(x, weight, bias)
    assert y.shape == (N, C_out, H, W)
    assert jnp.allclose(y, y_ref, atol=1e-5, rtol=1e-5)

    # Ragged spatial size (exercises the 128-granule pad path).
    x2 = jax.random.normal(k_x, (N, C_in, 10, 10), dtype=jnp.float32)
    y2 = jax.block_until_ready(outconv_pallas(x2, weight, bias))
    y2_ref = _reference(x2, weight, bias)
    assert y2.shape == (N, C_out, 10, 10)
    assert jnp.allclose(y2, y2_ref, atol=1e-5, rtol=1e-5)

    # Larger spatial size (exercises the spatial-tiled, chunked-MAC path).
    x3 = jax.random.normal(k_x, (1, C_in, 96, 96), dtype=jnp.float32)
    y3 = jax.block_until_ready(outconv_pallas(x3, weight, bias))
    y3_ref = _reference(x3, weight, bias)
    assert y3.shape == (1, C_out, 96, 96)
    assert jnp.allclose(y3, y3_ref, atol=1e-5, rtol=1e-5)

    print("KERNEL_OK")
</pallas_src>

<mosaic_0001>
module attributes {stable_mosaic.version = 11 : i64} {
  func.func @_outconv_vpu_kernel(%arg0: i32, %arg1: i32, %arg2: memref<1x4x2x128xf32, #tpu.memory_space<vmem>>, %arg3: memref<3x4xf32, #tpu.memory_space<smem>>, %arg4: memref<3xf32, #tpu.memory_space<smem>>, %arg5: memref<1x3x2x128xf32, #tpu.memory_space<vmem>>) attributes {dimension_semantics = [#tpu.dimension_semantics<parallel>, #tpu.dimension_semantics<parallel>], iteration_bounds = array<i64: 2, 1>, scalar_prefetch = 0 : i64, scratch_operands = 0 : i64, tpu.core_type = #tpu.core_type<tc>, window_params = [{transform_indices = @transform_0, window_bounds = array<i64: 1, 4, 2, 128>}, {transform_indices = @transform_1, window_bounds = array<i64: 3, 4>}, {transform_indices = @transform_2, window_bounds = array<i64: 3>}, {transform_indices = @transform_3, window_bounds = array<i64: 1, 3, 2, 128>}]} {
    %c0 = arith.constant 0 : index
    %c0_0 = arith.constant 0 : index
    %c0_1 = arith.constant 0 : index
    %c0_2 = arith.constant 0 : index
    %0 = vector.load %arg2[%c0, %c0_0, %c0_1, %c0_2] : memref<1x4x2x128xf32, #tpu.memory_space<vmem>>, vector<1x1x2x128xf32>
    %1 = vector.shape_cast %0 : vector<1x1x2x128xf32> to vector<2x128xf32>
    %c0_3 = arith.constant 0 : index
    %c0_4 = arith.constant 0 : index
    %2 = memref.load %arg3[%c0_3, %c0_4] : memref<3x4xf32, #tpu.memory_space<smem>>
    %3 = vector.broadcast %2 : f32 to vector<2x128xf32>
    %4 = arith.mulf %1, %3 : vector<2x128xf32>
    %c0_5 = arith.constant 0 : index
    %5 = memref.load %arg4[%c0_5] : memref<3xf32, #tpu.memory_space<smem>>
    %6 = vector.broadcast %5 : f32 to vector<2x128xf32>
    %7 = arith.addf %4, %6 : vector<2x128xf32>
    %c0_6 = arith.constant 0 : index
    %c1 = arith.constant 1 : index
    %c0_7 = arith.constant 0 : index
    %c0_8 = arith.constant 0 : index
    %8 = vector.load %arg2[%c0_6, %c1, %c0_7, %c0_8] : memref<1x4x2x128xf32, #tpu.memory_space<vmem>>, vector<1x1x2x128xf32>
    %9 = vector.shape_cast %8 : vector<1x1x2x128xf32> to vector<2x128xf32>
    %c0_9 = arith.constant 0 : index
    %c1_10 = arith.constant 1 : index
    %10 = memref.load %arg3[%c0_9, %c1_10] : memref<3x4xf32, #tpu.memory_space<smem>>
    %11 = vector.broadcast %10 : f32 to vector<2x128xf32>
    %12 = arith.mulf %9, %11 : vector<2x128xf32>
    %13 = arith.addf %7, %12 : vector<2x128xf32>
    %c0_11 = arith.constant 0 : index
    %c2 = arith.constant 2 : index
    %c0_12 = arith.constant 0 : index
    %c0_13 = arith.constant 0 : index
    %14 = vector.load %arg2[%c0_11, %c2, %c0_12, %c0_13] : memref<1x4x2x128xf32, #tpu.memory_space<vmem>>, vector<1x1x2x128xf32>
    %15 = vector.shape_cast %14 : vector<1x1x2x128xf32> to vector<2x128xf32>
    %c0_14 = arith.constant 0 : index
    %c2_15 = arith.constant 2 : index
    %16 = memref.load %arg3[%c0_14, %c2_15] : memref<3x4xf32, #tpu.memory_space<smem>>
    %17 = vector.broadcast %16 : f32 to vector<2x128xf32>
    %18 = arith.mulf %15, %17 : vector<2x128xf32>
    %19 = arith.addf %13, %18 : vector<2x128xf32>
    %c0_16 = arith.constant 0 : index
    %c3 = arith.constant 3 : index
    %c0_17 = arith.constant 0 : index
    %c0_18 = arith.constant 0 : index
    %20 = vector.load %arg2[%c0_16, %c3, %c0_17, %c0_18] : memref<1x4x2x128xf32, #tpu.memory_space<vmem>>, vector<1x1x2x128xf32>
    %21 = vector.shape_cast %20 : vector<1x1x2x128xf32> to vector<2x128xf32>
    %c0_19 = arith.constant 0 : index
    %c3_20 = arith.constant 3 : index
    %22 = memref.load %arg3[%c0_19, %c3_20] : memref<3x4xf32, #tpu.memory_space<smem>>
    %23 = vector.broadcast %22 : f32 to vector<2x128xf32>
    %24 = arith.mulf %21, %23 : vector<2x128xf32>
    %25 = arith.addf %19, %24 : vector<2x128xf32>
    %c0_21 = arith.constant 0 : index
    %c0_22 = arith.constant 0 : index
    %c0_23 = arith.constant 0 : index
    %c0_24 = arith.constant 0 : index
    %26 = vector.load %arg5[%c0_21, %c0_22, %c0_23, %c0_24] : memref<1x3x2x128xf32, #tpu.memory_space<vmem>>, vector<1x1x2x128xf32>
    %27 = vector.shape_cast %26 : vector<1x1x2x128xf32> to vector<2x128xf32>
    %28 = vector.shape_cast %25 : vector<2x128xf32> to vector<1x1x2x128xf32>
    tpu.vector_store %arg5[%c0_21, %c0_22, %c0_23, %c0_24], %28 {strides = array<i32>} : memref<1x3x2x128xf32, #tpu.memory_space<vmem>>, vector<1x1x2x128xf32>,
    %c0_25 = arith.constant 0 : index
    %c0_26 = arith.constant 0 : index
    %c0_27 = arith.constant 0 : index
    %c0_28 = arith.constant 0 : index
    %29 = vector.load %arg2[%c0_25, %c0_26, %c0_27, %c0_28] : memref<1x4x2x128xf32, #tpu.memory_space<vmem>>, vector<1x1x2x128xf32>
    %30 = vector.shape_cast %29 : vector<1x1x2x128xf32> to vector<2x128xf32>
    %c1_29 = arith.constant 1 : index
    %c0_30 = arith.constant 0 : index
    %31 = memref.load %arg3[%c1_29, %c0_30] : memref<3x4xf32, #tpu.memory_space<smem>>
    %32 = vector.broadcast %31 : f32 to vector<2x128xf32>
    %33 = arith.mulf %30, %32 : vector<2x128xf32>
    %c1_31 = arith.constant 1 : index
    %34 = memref.load %arg4[%c1_31] : memref<3xf32, #tpu.memory_space<smem>>
    %35 = vector.broadcast %34 : f32 to vector<2x128xf32>
    %36 = arith.addf %33, %35 : vector<2x128xf32>
    %c0_32 = arith.constant 0 : index
    %c1_33 = arith.constant 1 : index
    %c0_34 = arith.constant 0 : index
    %c0_35 = arith.constant 0 : index
    %37 = vector.load %arg2[%c0_32, %c1_33, %c0_34, %c0_35] : memref<1x4x2x128xf32, #tpu.memory_space<vmem>>, vector<1x1x2x128xf32>
    %38 = vector.shape_cast %37 : vector<1x1x2x128xf32> to vector<2x128xf32>
    %c1_36 = arith.constant 1 : index
    %c1_37 = arith.constant 1 : index
    %39 = memref.load %arg3[%c1_36, %c1_37] : memref<3x4xf32, #tpu.memory_space<smem>>
    %40 = vector.broadcast %39 : f32 to vector<2x128xf32>
    %41 = arith.mulf %38, %40 : vector<2x128xf32>
    %42 = arith.addf %36, %41 : vector<2x128xf32>
    %c0_38 = arith.constant 0 : index
    %c2_39 = arith.constant 2 : index
    %c0_40 = arith.constant 0 : index
    %c0_41 = arith.constant 0 : index
    %43 = vector.load %arg2[%c0_38, %c2_39, %c0_40, %c0_41] : memref<1x4x2x128xf32, #tpu.memory_space<vmem>>, vector<1x1x2x128xf32>
    %44 = vector.shape_cast %43 : vector<1x1x2x128xf32> to vector<2x128xf32>
    %c1_42 = arith.constant 1 : index
    %c2_43 = arith.constant 2 : index
    %45 = memref.load %arg3[%c1_42, %c2_43] : memref<3x4xf32, #tpu.memory_space<smem>>
    %46 = vector.broadcast %45 : f32 to vector<2x128xf32>
    %47 = arith.mulf %44, %46 : vector<2x128xf32>
    %48 = arith.addf %42, %47 : vector<2x128xf32>
    %c0_44 = arith.constant 0 : index
    %c3_45 = arith.constant 3 : index
    %c0_46 = arith.constant 0 : index
    %c0_47 = arith.constant 0 : index
    %49 = vector.load %arg2[%c0_44, %c3_45, %c0_46, %c0_47] : memref<1x4x2x128xf32, #tpu.memory_space<vmem>>, vector<1x1x2x128xf32>
    %50 = vector.shape_cast %49 : vector<1x1x2x128xf32> to vector<2x128xf32>
    %c1_48 = arith.constant 1 : index
    %c3_49 = arith.constant 3 : index
    %51 = memref.load %arg3[%c1_48, %c3_49] : memref<3x4xf32, #tpu.memory_space<smem>>
    %52 = vector.broadcast %51 : f32 to vector<2x128xf32>
    %53 = arith.mulf %50, %52 : vector<2x128xf32>
    %54 = arith.addf %48, %53 : vector<2x128xf32>
    %c0_50 = arith.constant 0 : index
    %c1_51 = arith.constant 1 : index
    %c0_52 = arith.constant 0 : index
    %c0_53 = arith.constant 0 : index
    %55 = vector.load %arg5[%c0_50, %c1_51, %c0_52, %c0_53] : memref<1x3x2x128xf32, #tpu.memory_space<vmem>>, vector<1x1x2x128xf32>
    %56 = vector.shape_cast %55 : vector<1x1x2x128xf32> to vector<2x128xf32>
    %57 = vector.shape_cast %54 : vector<2x128xf32> to vector<1x1x2x128xf32>
    tpu.vector_store %arg5[%c0_50, %c1_51, %c0_52, %c0_53], %57 {strides = array<i32>} : memref<1x3x2x128xf32, #tpu.memory_space<vmem>>, vector<1x1x2x128xf32>,
    %c0_54 = arith.constant 0 : index
    %c0_55 = arith.constant 0 : index
    %c0_56 = arith.constant 0 : index
    %c0_57 = arith.constant 0 : index
    %58 = vector.load %arg2[%c0_54, %c0_55, %c0_56, %c0_57] : memref<1x4x2x128xf32, #tpu.memory_space<vmem>>, vector<1x1x2x128xf32>
    %59 = vector.shape_cast %58 : vector<1x1x2x128xf32> to vector<2x128xf32>
    %c2_58 = arith.constant 2 : index
    %c0_59 = arith.constant 0 : index
    %60 = memref.load %arg3[%c2_58, %c0_59] : memref<3x4xf32, #tpu.memory_space<smem>>
    %61 = vector.broadcast %60 : f32 to vector<2x128xf32>
    %62 = arith.mulf %59, %61 : vector<2x128xf32>
    %c2_60 = arith.constant 2 : index
    %63 = memref.load %arg4[%c2_60] : memref<3xf32, #tpu.memory_space<smem>>
    %64 = vector.broadcast %63 : f32 to vector<2x128xf32>
    %65 = arith.addf %62, %64 : vector<2x128xf32>
    %c0_61 = arith.constant 0 : index
    %c1_62 = arith.constant 1 : index
    %c0_63 = arith.constant 0 : index
    %c0_64 = arith.constant 0 : index
    %66 = vector.load %arg2[%c0_61, %c1_62, %c0_63, %c0_64] : memref<1x4x2x128xf32, #tpu.memory_space<vmem>>, vector<1x1x2x128xf32>
    %67 = vector.shape_cast %66 : vector<1x1x2x128xf32> to vector<2x128xf32>
    %c2_65 = arith.constant 2 : index
    %c1_66 = arith.constant 1 : index
    %68 = memref.load %arg3[%c2_65, %c1_66] : memref<3x4xf32, #tpu.memory_space<smem>>
    %69 = vector.broadcast %68 : f32 to vector<2x128xf32>
    %70 = arith.mulf %67, %69 : vector<2x128xf32>
    %71 = arith.addf %65, %70 : vector<2x128xf32>
    %c0_67 = arith.constant 0 : index
    %c2_68 = arith.constant 2 : index
    %c0_69 = arith.constant 0 : index
    %c0_70 = arith.constant 0 : index
    %72 = vector.load %arg2[%c0_67, %c2_68, %c0_69, %c0_70] : memref<1x4x2x128xf32, #tpu.memory_space<vmem>>, vector<1x1x2x128xf32>
    %73 = vector.shape_cast %72 : vector<1x1x2x128xf32> to vector<2x128xf32>
    %c2_71 = arith.constant 2 : index
    %c2_72 = arith.constant 2 : index
    %74 = memref.load %arg3[%c2_71, %c2_72] : memref<3x4xf32, #tpu.memory_space<smem>>
    %75 = vector.broadcast %74 : f32 to vector<2x128xf32>
    %76 = arith.mulf %73, %75 : vector<2x128xf32>
    %77 = arith.addf %71, %76 : vector<2x128xf32>
    %c0_73 = arith.constant 0 : index
    %c3_74 = arith.constant 3 : index
    %c0_75 = arith.constant 0 : index
    %c0_76 = arith.constant 0 : index
    %78 = vector.load %arg2[%c0_73, %c3_74, %c0_75, %c0_76] : memref<1x4x2x128xf32, #tpu.memory_space<vmem>>, vector<1x1x2x128xf32>
    %79 = vector.shape_cast %78 : vector<1x1x2x128xf32> to vector<2x128xf32>
    %c2_77 = arith.constant 2 : index
    %c3_78 = arith.constant 3 : index
    %80 = memref.load %arg3[%c2_77, %c3_78] : memref<3x4xf32, #tpu.memory_space<smem>>
    %81 = vector.broadcast %80 : f32 to vector<2x128xf32>
    %82 = arith.mulf %79, %81 : vector<2x128xf32>
    %83 = arith.addf %77, %82 : vector<2x128xf32>
    %c0_79 = arith.constant 0 : index
    %c2_80 = arith.constant 2 : index
    %c0_81 = arith.constant 0 : index
    %c0_82 = arith.constant 0 : index
    %84 = vector.load %arg5[%c0_79, %c2_80, %c0_81, %c0_82] : memref<1x3x2x128xf32, #tpu.memory_space<vmem>>, vector<1x1x2x128xf32>
    %85 = vector.shape_cast %84 : vector<1x1x2x128xf32> to vector<2x128xf32>
    %86 = vector.shape_cast %83 : vector<2x128xf32> to vector<1x1x2x128xf32>
    tpu.vector_store %arg5[%c0_79, %c2_80, %c0_81, %c0_82], %86 {strides = array<i32>} : memref<1x3x2x128xf32, #tpu.memory_space<vmem>>, vector<1x1x2x128xf32>,
    return
  }
  func.func @transform_0(%arg0: i32, %arg1: i32) -> (i32, i32, i32, i32) {
    %c0_i32 = arith.constant 0 : i32
    %c0_i32_0 = arith.constant 0 : i32
    %c0_i32_1 = arith.constant 0 : i32
    return %arg0, %c0_i32, %arg1, %c0_i32_0 : i32, i32, i32, i32
  }
  func.func @transform_1(%arg0: i32, %arg1: i32) -> (i32, i32) {
    %c0_i32 = arith.constant 0 : i32
    %c0_i32_0 = arith.constant 0 : i32
    %c0_i32_1 = arith.constant 0 : i32
    return %c0_i32, %c0_i32_0 : i32, i32
  }
  func.func @transform_2(%arg0: i32, %arg1: i32) -> i32 {
    %c0_i32 = arith.constant 0 : i32
    %c0_i32_0 = arith.constant 0 : i32
    return %c0_i32 : i32
  }
  func.func @transform_3(%arg0: i32, %arg1: i32) -> (i32, i32, i32, i32) {
    %c0_i32 = arith.constant 0 : i32
    %c0_i32_0 = arith.constant 0 : i32
    %c0_i32_1 = arith.constant 0 : i32
    return %arg0, %c0_i32, %arg1, %c0_i32_0 : i32, i32, i32, i32
  }
}

</mosaic_0001>

<bundles_post_ra>
// kernel: tpu_custom_call.1
= control target key start
LH: loop header
LB: loop body
LE: loop exit
PB: predicated region body
PF: predicated region fallthrough
CT: control target
= control target key end

     0   :  { %s926_s0 = inlined_call_operand.hbm [shape: f32[2,4,2,128], index: 0, kind: input, shape index: {}]   ;;  %s927_s1 = inlined_call_operand.hbm [shape: f32[3,4], index: 1, kind: input, shape index: {}]   ;;  %s928_s2 = inlined_call_operand.vmem [shape: f32[3], index: 2, kind: input, shape index: {}]   ;;  %s929_s3 = inlined_call_operand.hbm [shape: f32[2,3,2,128], index: 3, kind: output, shape index: {}]  }
   0x1   :  { %931 = sst [smem:[#allocation14_spill]] %s927_s1 }
   0x2   :  { %8 = vsyncpa [#allocation3], 0 }
   0x3   :  { %10 = vsyncpa [#allocation3 + $0x1], 0 }
   0x4   :  { %11 = vsyncpa [#allocation5], 0 }
   0x5   :  { %12 = vsyncpa [#allocation6], 0 }
   0x6   :  { %13 = vsyncpa [#allocation4], 0 }
   0x7   :  { %15 = vsyncpa [#allocation4 + $0x1], 0  ;;  %s731_s12 = smov 0   ;;  %s733_s13 = smov 0  }
   0x8   :  { %s735_s14 = smov 0   ;;  %s737_s15 = smov 0  }
   0x9   :  { %s739_s16 = smov 0   ;;  %s741_s17 = smov 0  }
   0xa LB: > { %s429_s18 = sadd.s32 4294967295, %s701_s17   ;;  %s430_s19 = sadd.s32 4294967294, %s701_s17   ;;  %s701_s17 = sphi %s741_s17, %s21_s17   ;;  %s697_s16 = sphi %s739_s16, %s947_s16   ;;  %s693_s15 = sphi %s737_s15, %s946_s15   ;;  %s689_s14 = sphi %s735_s14, %s945_s14   ;;  %s685_s13 = sphi %s733_s13, %s944_s13   ;;  %s681_s12 = sphi %s731_s12, %s943_s12  }
   0xb   : > { %s42_s20 = sadd.s32 1, %s689_s14  ;;  %p49_p0 = scmp.ne.s32.totalorder %s689_s14, %s685_s13 }
   0xc   : > { %p50_p1 = scmp.eq.s32.totalorder %s701_s17, 0  ;;  %p55_p2 = scmp.ne.s32.totalorder %s685_s13, %s681_s12 }
   0xd   : > { %p769_p3 = scmp.eq.s32.totalorder %s429_s18, 0  ;;  %p123_p4 = scmp.eq.s32.totalorder %s429_s18, 1 }
   0xe   : > { %p51_p5 = por %p50_p1, %p49_p0  ;;  %p129_p6 = scmp.eq.s32.totalorder %s430_s19, 1 }
   0xf   : > { %p775_p7 = por %p769_p3, %p55_p2  ;;  %p779_p8 = por %p123_p4, %p49_p0 }
  0x10   : > { %p783_p9 = por %p129_p6, %p55_p2  ;;  %p431_p10 = scmp.ge.s32.totalorder %s701_s17, 1 }
  0x11   : > { %s934_s23 = scalar_select %p779_p8, 1, 0 }
  0x12   : > { %s935_s24 = scalar_select %p783_p9, 1, 0 }
  0x13   : > { %p136_p11 = scmp.lt.s32.totalorder %s701_s17, 3  ;;  %p501_p1 = scmp.lt.s32.totalorder %s701_s17, 2 }
  0x14   : > { %s158_s28 = sshll.u32 %s928_s2, 4  ;;  %s169_s4 = sand.u32 1, %s689_s14   ;;  %s159_s28 = int_to_ptr.vmem [resolvable:$true] %s158_s28 }
  0x15   : > { %p790_p13 = pnand %p431_p10, %p136_p11  ;;  %p800_p4 = pnand %p501_p1, %p51_p5 }
  0x16   : > { %s33_s5 = sadd.s32 1, %s697_s16  ;;  %s703_s6 = smov [#allocation7]  }
  0x17   : > { %p484_p0 = pneg %p790_p13  ;;  %s939_s1 = sld [smem:[#allocation14_spill]] }
  0x18   : > { %s570_s9 = scalar_lea.vmem %s159_s28, 16  ;;  %p578_p1 = scmp.lt.s32.totalorder %s159_s28, %s159_s28 }
  0x19   : > { %p806_p2 = pnand %p484_p0, %p769_p3  ;;  %p571_p5 = scmp.ne.s32.totalorder %s159_s28, %s570_s9 }
  0x1a   : > { %p579_p0 = scmp.lt.s32.totalorder %s570_s9, %s570_s9 }
  0x1b   : > { %p572_p6 = pneg %p806_p2 }
  0x1c   : > { %p580_p12 = por %p579_p0, %p578_p1 }
  0x1d   : > { %487 = dma.hbm_to_smem (!%p806_p2), %s939_s1, 64, %s703_s6, [#allocation5]  }
  0x1e   : > { %p573_p10 = pnand %p572_p6, %p571_p5 }
  0x20   : > { %p574_p11 = pneg %p573_p10 }
  0x22   : > { %p581_p9 = pnand %p580_p12, %p574_p11 }
  0x24   : > { %584 = shalt.err (!%p581_p9)
}
  0x25   : > { %s704_s10 = smov [#allocation8]   ;;  %p35_p8 = scmp.ge.s32.totalorder %s33_s5, 2 }
  0x26   : > { %490 = dma.vmem_to_smem (!%p806_p2), %s159_s28, 16, %s704_s10, [#allocation6]  }
  0x27   : > { %s435_s11 = sshll.u32 %s169_s4, 3  ;;  %s469_s18 = sshll.u32 %s697_s16, 7 }
  0x28   : > { %s949_s5 = smov (%p35_p8, %s33_s5), 0  ;;  %s180_s27 = scalar_lea.hbm %s926_s0, %s469_s18 }
  0x29   : > { %s37_s6 = ssub.s32 %s697_s16, %s949_s5  ;;  %s173_s7 = scalar_lea.vmem [#allocation2], %s435_s11 }
  0x2a   : > { %s181_s8 = sshll.u32 %s173_s7, 4  ;;  %p40_p9 = scmp.eq.s32.totalorder %s37_s6, 0  ;;  %s182_s8 = int_to_ptr.vmem [resolvable:$true] %s181_s8 }
  0x2b   : > { %s170_s9 = scalar_lea.sflag [#allocation3], %s169_s4  ;;  %p587_p12 = pneg %p800_p4 }
  0x2c   : > { %s832_s30 = scalar_select %p40_p9, %s689_s14, %s42_s20  }
  0x2d   : > { %s598_s28 = scalar_lea.vmem %s182_s8, 128  ;;  %s705_s10 = smov [#allocation2]  }
  0x2e   : > { %p599_p2 = scmp.ne.s32.totalorder %s182_s8, %s598_s28  ;;  %s603_s1 = sshll.u32 %s705_s10, 4  ;;  %s604_s1 = int_to_ptr.vmem [resolvable:$false] %s603_s1 }
  0x2f   : > { %s605_s19 = scalar_lea.vmem %s604_s1, 256  ;;  %p606_p6 = scmp.lt.s32.totalorder %s182_s8, %s604_s1 }
  0x30   : > { %p601_p8 = pnand %p599_p2, %p587_p12  ;;  %p607_p10 = scmp.lt.s32.totalorder %s605_s19, %s598_s28 }
  0x32   : > { %p602_p5 = pneg %p601_p8  ;;  %p608_p11 = por %p607_p10, %p606_p6 }
  0x34   : > { %p609_p1 = pnand %p608_p11, %p602_p5 }
  0x36   : > { %612 = shalt.err (!%p609_p1)
}
  0x37   : > { %s706_s11 = smov 32   ;;  %s707_s20 = smov 2  }
  0x38   : > { %494 = dma.hbm_to_vmem [thread:$0]  (!%p800_p4), %s180_s27, 128, %s182_s8, %s170_s9, %s706_s11, %s706_s11, %s707_s20  }
  0x39   : > { %193 = sbr.rel (%p790_p13) target bundleno = 110 (0x6e), region = 32  ;;  %s841_s4 = sand.u32 (!%p790_p13), 1, %s685_s13  }
  0x3a   : > { %s439_s18 = sshll.u32 (!%p790_p13), %s841_s4, 3  ;;  %s196_s1 = scalar_lea.sflag (!%p790_p13), [#allocation3], %s841_s4 }
  0x3b   : > { %s845_s26 = scalar_lea.vmem (!%p790_p13), [#allocation2], %s439_s18 }
  0x3e   : > { %664 = dma.done.wait (%p775_p7), %s196_s1, 128  }
  0x3f   : > { %666 = vsyncadd (%p775_p7), %s196_s1, 4294967168 }
  0x40   : > { %668 = dma.done.wait (%p769_p3), [#allocation5], 64  }
  0x41   : > { %670 = vsyncadd (%p769_p3), [#allocation5], 4294967232 }
  0x42   : > { %672 = dma.done.wait (%p769_p3), [#allocation6], 16  }
  0x43   : > { %674 = vsyncadd (%p769_p3), [#allocation6], 4294967280 }
  0x44   : > { %212 = sfence }
  0x45   : > { %s232_s25 = sld [smem:[#allocation7]]  ;;  %v231_v0 = vld [vmem:[%s845_s26] sm:$0x3]  ;;  %v442_v2 = vld [vmem:[%s845_s26 + $0x2] sm:$0x3]  ;;  %s470_s10 = smul.u32 6, %s841_s4 }
  0x46   : > { %s235_s22 = sld [smem:[#allocation8]]  ;;  %v444_v5 = vld [vmem:[%s845_s26 + $0x4] sm:$0x3]  ;;  %v446_v7 = vld [vmem:[%s845_s26 + $0x6] sm:$0x3]  ;;  %p940_p7 = scmp.ne.s32.totalorder %s934_s23, 0 }
  0x47   : > { %s443_s29 = sld [smem:[#allocation7 + $0x1]]  ;;  %v257_v11 = vld [vmem:[%s845_s26] sm:$0x3]  ;;  %v450_v17 = vld [vmem:[%s845_s26 + $0x2] sm:$0x3] }
  0x48   : > { %s445_s27 = sld [smem:[#allocation7 + $0x2]]  ;;  %v452_v20 = vld [vmem:[%s845_s26 + $0x4] sm:$0x3]  ;;  %v454_v23 = vld [vmem:[%s845_s26 + $0x6] sm:$0x3] }
  0x49   : > { %s447_s6 = sld [smem:[#allocation7 + $0x3]]  ;;  %v281_v27 = vld [vmem:[%s845_s26] sm:$0x3]  ;;  %v459_v34 = vld [vmem:[%s845_s26 + $0x2] sm:$0x3] }
  0x4a   : > { %s448_s7 = sld [smem:[#allocation7 + $0x80]]  ;;  %v461_v37 = vld [vmem:[%s845_s26 + $0x4] sm:$0x3]  ;;  %v463_v40 = vld [vmem:[%s845_s26 + $0x6] sm:$0x3] }
  0x4b   : > { %v233_v1 = vstv %s232_s25  ;;  %s449_s8 = sld [smem:[#allocation8 + $0x1]]  ;;  %s230_s25 = scalar_lea.vmem [#allocation9], %s470_s10 }
  0x4c   : > { %v234_v3 = vmul.f32 %v233_v1, %v231_v0  ;;  %v236_v4 = vstv %s235_s22  ;;  %s451_s21 = sld [smem:[#allocation7 + $0x81]]  ;;  %s320_s22 = sshll.u32 %s230_s25, 4  ;;  %s873_s22 = int_to_ptr.vmem [resolvable:$true] %s320_s22 }
  0x4d   : > { %v241_v6 = vstv %s443_s29  ;;  %s453_s9 = sld [smem:[#allocation7 + $0x82]]  ;;  %s471_s29 = smul.u32 96, %s693_s15 }
  0x4e   : > { %v237_v8 = vadd.f32 %v236_v4, %v234_v3  ;;  %v242_v9 = vmul.f32 %v442_v2, %v241_v6  ;;  %v247_v10 = vstv %s445_s27  ;;  %s455_s28 = sld [smem:[#allocation7 + $0x83]]  ;;  %s708_s15 = smov [#allocation9]  }
  0x4f   : > { %v248_v12 = vmul.f32 %v444_v5, %v247_v10  ;;  %v253_v13 = vstv %s447_s6  ;;  %s457_s19 = sld [smem:[#allocation7 + $0x100]]  ;;  %s878_s6 = scalar_lea.hbm %s929_s3, %s471_s29 }
  0x50   : > { %v243_v14 = vadd.f32 %v242_v9, %v237_v8  ;;  %v254_v15 = vmul.f32 %v446_v7, %v253_v13  ;;  %v259_v16 = vstv %s448_s7  ;;  %s458_s11 = sld [smem:[#allocation8 + $0x2]]  ;;  %s306_s7 = scalar_lea.sflag [#allocation4], %s841_s4 }
  0x51   : > { %v260_v18 = vmul.f32 %v259_v16, %v257_v11  ;;  %v262_v19 = vstv %s449_s8  ;;  %s460_s20 = sld [smem:[#allocation7 + $0x101]]  ;;  %s613_s8 = scalar_lea.vmem %s873_s22, 96 }
  0x52   : > { %v249_v21 = vadd.f32 %v248_v12, %v243_v14  ;;  %v266_v22 = vstv %s451_s21  ;;  %s462_s18 = sld [smem:[#allocation7 + $0x102]]  ;;  %p614_p3 = scmp.ne.s32.totalorder %s873_s22, %s613_s8 }
  0x53   : > { %v263_v24 = vadd.f32 %v262_v19, %v260_v18  ;;  %v267_v25 = vmul.f32 %v450_v17, %v266_v22  ;;  %v271_v26 = vstv %s453_s9  ;;  %s464_s1 = sld [smem:[#allocation7 + $0x103]]  ;;  %s617_s21 = sshll.u32 %s708_s15, 4  ;;  %s618_s21 = int_to_ptr.vmem [resolvable:$false] %s617_s21 }
  0x54   : > { %v255_v28 = vadd.f32 %v254_v15, %v249_v21  ;;  %v272_v29 = vmul.f32 %v452_v20, %v271_v26  ;;  %v276_v30 = vstv %s455_s28  ;;  %p615_p13 = pnand %p614_p3, %p940_p7  ;;  %s619_s9 = scalar_lea.vmem %s618_s21, 192 }
  0x55   : > { %v268_v31 = vadd.f32 %v267_v25, %v263_v24  ;;  %v277_v32 = vmul.f32 %v454_v23, %v276_v30  ;;  %v283_v33 = vstv %s457_s19  ;;  %p620_p0 = scmp.lt.s32.totalorder %s873_s22, %s618_s21  ;;  %p621_p9 = scmp.lt.s32.totalorder %s619_s9, %s613_s8 }
  0x56   : > { %256 = vst [vmem:[%s230_s25] sm:$0x3] %v255_v28  ;;  %v284_v35 = vmul.f32 %v283_v33, %v281_v27  ;;  %v286_v36 = vstv %s458_s11  ;;  %p616_p4 = pneg %p615_p13 }
  0x57   : > { %v273_v38 = vadd.f32 %v272_v29, %v268_v31  ;;  %v290_v39 = vstv %s460_s20  ;;  %p622_p12 = por %p621_p9, %p620_p0 }
  0x58   : > { %v287_v41 = vadd.f32 %v286_v36, %v284_v35  ;;  %v291_v42 = vmul.f32 %v459_v34, %v290_v39  ;;  %v295_v43 = vstv %s462_s18 }
  0x59   : > { %v278_v44 = vadd.f32 %v277_v32, %v273_v38  ;;  %v296_v45 = vmul.f32 %v461_v37, %v295_v43  ;;  %v300_v46 = vstv %s464_s1  ;;  %p623_p2 = pnand %p622_p12, %p616_p4 }
  0x5a   : > { %v292_v47 = vadd.f32 %v291_v42, %v287_v41  ;;  %v301_v48 = vmul.f32 %v463_v40, %v300_v46 }
  0x5b   : > { %456 = vst [vmem:[%s230_s25 + $0x2] sm:$0x3] %v278_v44 }
  0x5c   : > { %v297_v49 = vadd.f32 %v296_v45, %v292_v47 }
  0x5e   : > { %v302_v50 = vadd.f32 %v301_v48, %v297_v49 }
  0x60   : > { %465 = vst [vmem:[%s230_s25 + $0x4] sm:$0x3] %v302_v50 }
  0x61   : > { %626 = shalt.err (!%p623_p2)
}
  0x62   : > { %s627_s28 = scalar_lea.hbm %s878_s6, 96  ;;  %s631_s11 = scalar_lea.hbm %s929_s3, 192 }
  0x63   : > { %p628_p8 = scmp.ne.s32.totalorder %s878_s6, %s627_s28  ;;  %p632_p10 = scmp.lt.s32.totalorder %s878_s6, %s929_s3 }
  0x64   : > { %p633_p11 = scmp.lt.s32.totalorder %s631_s11, %s627_s28 }
  0x65   : > { %p629_p5 = pnand %p628_p8, %p940_p7 }
  0x66   : > { %p634_p1 = por %p633_p11, %p632_p10 }
  0x67   : > { %p630_p6 = pneg %p629_p5 }
  0x69   : > { %p635_p3 = pnand %p634_p1, %p630_p6 }
  0x6b   : > { %638 = shalt.err (!%p635_p3)
}
  0x6c   : > { %s709_s1 = smov 32   ;;  %s710_s25 = smov 2  }
  0x6d   : > { %482 = dma.vmem_to_hbm [thread:$0]  (%p940_p7), %s873_s22, 96, %s878_s6, %s306_s7, %s709_s1, %s709_s1, %s710_s25  }
  0x6e PF: > { %s335_s29 = sand.u32 1, %s681_s12   ;;  %p941_p13 = scmp.ne.s32.totalorder %s935_s24, 0 }
  0x6f   : > { %p942_p4 = scmp.ge.s32.totalorder %s701_s17, 2  ;;  %s336_s26 = scalar_lea.sflag [#allocation4], %s335_s29 }
  0x71   : > { %p496_p0 = pnand %p942_p4, %p941_p13 }
  0x73   : > { %p497_p9 = pneg %p496_p0 }
  0x75   : > { %676 = dma.done.wait (%p497_p9), %s336_s26, 96  }
  0x76   : > { %678 = vsyncadd (%p497_p9), %s336_s26, 4294967200  ;;  %s21_s17 = sadd.s32 1, %s701_s17   ;;  %s943_s12 = smov %s685_s13 }
  0x77   : > { %p18_p12 = scmp.ge.s32.totalorder %s21_s17, 4   ;;  %s944_s13 = smov %s689_s14 }
  0x78   : > { %s945_s14 = smov %s832_s30  ;;  %s946_s15 = smov %s697_s16 }
  0x79   : > { %s947_s16 = smov %s949_s5  ;;  %20 = sbr.rel (!%p18_p12) target bundleno = 10 (0xa), region = 92 }
  0x7e   :  { %341 = vsyncpa [#allocation3], 1 }
  0x7f   :  { %343 = vsyncpa [#allocation3 + $0x1], 1 }
  0x80   :  { %344 = vsyncpa [#allocation4], 1 }
  0x81   :  { %346 = vsyncpa [#allocation4 + $0x1], 1 }
  0x82   :  { %347 = vsyncpa [#allocation5], 1 }
  0x83   :  { %349 = vsyncpa [#allocation5 + $0x1], 1 }
  0x84   :  { %350 = vsyncpa [#allocation6], 1 }
  0x85   :  { %352 = vsyncpa [#allocation6 + $0x1], 1 }

</bundles_post_ra>
